<compile_context>
chip_gen: v6e
topology: v6e:2x2x1
jax: 0.10.0
libtpu: 0.0.40
codegen_flags: <defaults>
</compile_context>

<pallas_src>
import jax
import jax.numpy as jnp
from jax.experimental import pallas as pl
from jax.experimental.pallas import tpu as pltpu

# ---- model config (mirrors MLPRecommender __init__) --------------------------
MAX_VOCAB   = 10            # every entry of max_input_features
F_FEATS     = 8             # len(max_input_features)
VOCAB       = MAX_VOCAB + 1 # 11
VPAD        = 16            # padded per-feature vocab so F_FEATS * VPAD == 128 lanes
E           = 32            # embedding_size
HIDDEN      = [64, 128]     # hidden_nodes_list
NUM_CLASSES = 16            # num_classes
B           = 4             # batch size
EPS         = 1e-5          # nn.BatchNorm1d default eps

assert F_FEATS * VPAD == 128
assert max(HIDDEN[0], HIDDEN[1], NUM_CLASSES) <= F_FEATS * VPAD  # bias-slab packing


# ---- Pallas kernel ------------------------------------------------------------
def mlp_kernel(idx_ref, tbl_ref, bias_ref, w2_ref, wo_ref, out_ref):
    bsz, n_feat = idx_ref.shape
    fv, h0 = tbl_ref.shape                   # (F*VPAD, H0) = (128, 64)
    h1 = w2_ref.shape[1]
    ncls = wo_ref.shape[1]
    vpad = fv // n_feat

    # ---- fused embedding gather + Linear1 (+BN1) as one 128-lane contraction ----
    # multihot[b, vpad*f + idx[b,f]] = 1 ;  table row (vpad*f + v) = emb[f, v] @ W1[f] * bn1_scale
    idx = idx_ref[...]                                                     # (B, F) int32
    lane = jax.lax.broadcasted_iota(jnp.int32, (bsz, n_feat, fv), 2)       # lane id
    feat = jax.lax.broadcasted_iota(jnp.int32, (bsz, n_feat, fv), 1)       # feature id
    hits = (lane == idx[:, :, None] + feat * vpad).astype(jnp.float32)     # (B, F, 128)
    multihot = jnp.sum(hits, axis=1).astype(jnp.bfloat16)                  # (B, 128) exact 0/1

    bias = bias_ref[...]                                                   # (3, 128) f32
    z1 = jnp.dot(multihot, tbl_ref[...], preferred_element_type=jnp.float32)   # (B, H0)
    h = jnp.maximum(z1 + bias[0:1, :h0], 0.0)                              # f32 epilogue

    z2 = jnp.dot(h.astype(jnp.bfloat16), w2_ref[...],
                 preferred_element_type=jnp.float32)                       # (B, H1)
    h = jnp.maximum(z2 + bias[1:2, :h1], 0.0)

    out_ref[...] = jnp.dot(h.astype(jnp.bfloat16), wo_ref[...],
                           preferred_element_type=jnp.float32) + bias[2:3, :ncls]


# ---- wrapper -------------------------------------------------------------------
def _full_spec(a):
    return pl.BlockSpec(a.shape, lambda i, _nd=a.ndim: (0,) * _nd)


def forward(x_idx, fp):
    bsz = x_idx.shape[0]
    args = (x_idx, fp["tbl"], fp["bias"], fp["w2"], fp["wo"])
    return pl.pallas_call(
        mlp_kernel,
        out_shape=jax.ShapeDtypeStruct((bsz, NUM_CLASSES), jnp.float32),
        grid=(1,),
        in_specs=[_full_spec(a) for a in args],
        out_specs=pl.BlockSpec((bsz, NUM_CLASSES), lambda i: (0, 0)),
        compiler_params=pltpu.CompilerParams(dimension_semantics=("arbitrary",)),
    )(*args)


# ---- deterministic parameter init (raw, PyTorch-style layout) -------------------
def init_params(key):
    ks = jax.random.split(key, 16)

    def w(k, shape, scale=0.1):
        return (scale * jax.random.normal(k, shape)).astype(jnp.float32)

    h0, h1 = HIDDEN
    p = {}
    p["emb"] = w(ks[0], (F_FEATS, VOCAB, E), 1.0)        # nn.Embedding ~ N(0, 1)
    p["w1"]  = w(ks[1], (F_FEATS * E, h0))               # Linear(F*E -> H0), (in,out) layout
    p["b1"]  = w(ks[2], (h0,))
    p["bn1_gamma"] = 1.0 + w(ks[3], (h0,))
    p["bn1_beta"]  = w(ks[4], (h0,))
    p["bn1_mean"]  = w(ks[5], (h0,))
    p["bn1_var"]   = 0.5 + jnp.abs(w(ks[6], (h0,), 1.0))
    p["w2"]  = w(ks[7], (h0, h1))                        # Linear(H0 -> H1)
    p["b2"]  = w(ks[8], (h1,))
    p["bn2_gamma"] = 1.0 + w(ks[9], (h1,))
    p["bn2_beta"]  = w(ks[10], (h1,))
    p["bn2_mean"]  = w(ks[11], (h1,))
    p["bn2_var"]   = 0.5 + jnp.abs(w(ks[12], (h1,), 1.0))
    p["wo"]  = w(ks[13], (h1, NUM_CLASSES))              # Linear(H1 -> num_classes)
    p["bo"]  = w(ks[14], (NUM_CLASSES,))
    return p


# ---- constant folding at param-prep time (input-independent) ---------------------
def fold_params(p):
    h0, h1 = HIDDEN
    # layer 1: fold embedding, Linear1 weight and eval-mode BN1 into one table
    s1 = p["bn1_gamma"] * jax.lax.rsqrt(p["bn1_var"] + EPS)                   # (H0,)
    w1 = p["w1"].reshape(F_FEATS, E, h0)                                      # (F,E,H0)
    tbl = jnp.einsum("fve,feh->fvh", p["emb"], w1) * s1[None, None, :]        # (F,V,H0)
    tbl = jnp.pad(tbl, ((0, 0), (0, VPAD - VOCAB), (0, 0)))                   # (F,VPAD,H0)
    tbl = tbl.reshape(F_FEATS * VPAD, h0).astype(jnp.bfloat16)                # (128,64)
    b1 = (p["b1"] - p["bn1_mean"]) * s1 + p["bn1_beta"]                       # (H0,) f32

    # layer 2: fold eval-mode BN2 into Linear2
    s2 = p["bn2_gamma"] * jax.lax.rsqrt(p["bn2_var"] + EPS)                   # (H1,)
    w2 = (p["w2"] * s2[None, :]).astype(jnp.bfloat16)                         # (H0,H1)
    b2 = (p["b2"] - p["bn2_mean"]) * s2 + p["bn2_beta"]                       # (H1,) f32

    wo = p["wo"].astype(jnp.bfloat16)                                         # (H1,C)
    bo = p["bo"].astype(jnp.float32)                                          # (C,)

    # pack the 3 f32 epilogue bias vectors into one (3, 128) slab (fewer DMAs)
    lanes = F_FEATS * VPAD
    bias = jnp.zeros((3, lanes), jnp.float32)
    bias = bias.at[0, :h0].set(b1)
    bias = bias.at[1, :h1].set(b2)
    bias = bias.at[2, :NUM_CLASSES].set(bo)

    return {"tbl": tbl, "bias": bias, "w2": w2, "wo": wo,
            "b1": b1, "b2": b2, "bo": bo}   # b1/b2/bo kept only for the reference


# ---- references for validation ----------------------------------------------------
def reference_fp32(x_idx, p):
    """Pure-JAX f32 reproduction of the original PyTorch module (eval-mode BN)."""
    x = p["emb"][jnp.arange(F_FEATS)[None, :], x_idx]      # (B, F, E) == permute(0,2,1)
    x = x.reshape(x_idx.shape[0], -1)                       # (B, F*E)

    def lin_bn_relu(h, wmat, b, g, bt, m, v):
        z = h @ wmat + b
        return jax.nn.relu((z - m) / jnp.sqrt(v + EPS) * g + bt)

    h = lin_bn_relu(x, p["w1"], p["b1"], p["bn1_gamma"], p["bn1_beta"],
                    p["bn1_mean"], p["bn1_var"])
    h = lin_bn_relu(h, p["w2"], p["b2"], p["bn2_gamma"], p["bn2_beta"],
                    p["bn2_mean"], p["bn2_var"])
    return h @ p["wo"] + p["bo"]


def reference_folded(x_idx, fp):
    """Same folded bf16 math as the kernel, in pure JAX (tight numerical check)."""
    flat = x_idx + VPAD * jnp.arange(F_FEATS, dtype=jnp.int32)[None, :]
    multihot = jax.nn.one_hot(flat, F_FEATS * VPAD, dtype=jnp.float32).sum(axis=1)
    z1 = jnp.dot(multihot.astype(jnp.bfloat16), fp["tbl"],
                 preferred_element_type=jnp.float32) + fp["b1"]
    h = jax.nn.relu(z1)
    z2 = jnp.dot(h.astype(jnp.bfloat16), fp["w2"],
                 preferred_element_type=jnp.float32) + fp["b2"]
    h = jax.nn.relu(z2)
    return jnp.dot(h.astype(jnp.bfloat16), fp["wo"],
                   preferred_element_type=jnp.float32) + fp["bo"]


if __name__ == "__main__":
    key = jax.random.PRNGKey(0)
    kp, kx = jax.random.split(key)
    raw = init_params(kp)
    fp = fold_params(raw)
    x_idx = jax.random.randint(kx, (B, F_FEATS), 0, VOCAB, dtype=jnp.int32)

    out = jax.jit(forward)(x_idx, fp)
    jax.block_until_ready(out)
    assert out.shape == (B, NUM_CLASSES)

    # tight check against identical folded/bf16 math
    ref_tight = reference_folded(x_idx, fp)
    assert jnp.allclose(out, ref_tight, atol=5e-3, rtol=5e-3), "kernel vs folded reference mismatch"

    # semantic check against the f32 PyTorch-style module (bf16-appropriate tolerance)
    ref = reference_fp32(x_idx, raw)
    assert jnp.allclose(out, ref, atol=5e-2, rtol=5e-2), "kernel vs fp32 module reference mismatch"

    print("KERNEL_OK")
</pallas_src>

<mosaic_0001>
module attributes {stable_mosaic.version = 11 : i64} {
  func.func @mlp_kernel(%arg0: i32, %arg1: memref<4x8xi32, #tpu.memory_space<vmem>>, %arg2: memref<128x64xbf16, #tpu.memory_space<vmem>>, %arg3: memref<3x128xf32, #tpu.memory_space<vmem>>, %arg4: memref<64x128xbf16, #tpu.memory_space<vmem>>, %arg5: memref<128x16xbf16, #tpu.memory_space<vmem>>, %arg6: memref<4x16xf32, #tpu.memory_space<vmem>>) attributes {dimension_semantics = [#tpu.dimension_semantics<arbitrary>], iteration_bounds = array<i64: 1>, scalar_prefetch = 0 : i64, scratch_operands = 0 : i64, tpu.core_type = #tpu.core_type<tc>, window_params = [{pipeline_mode = #tpu.pipeline_mode<synchronous>, transform_indices = @transform_0, window_bounds = array<i64: 4, 8>}, {pipeline_mode = #tpu.pipeline_mode<synchronous>, transform_indices = @transform_1, window_bounds = array<i64: 128, 64>}, {pipeline_mode = #tpu.pipeline_mode<synchronous>, transform_indices = @transform_2, window_bounds = array<i64: 3, 128>}, {pipeline_mode = #tpu.pipeline_mode<synchronous>, transform_indices = @transform_3, window_bounds = array<i64: 64, 128>}, {pipeline_mode = #tpu.pipeline_mode<synchronous>, transform_indices = @transform_4, window_bounds = array<i64: 128, 16>}, {pipeline_mode = #tpu.pipeline_mode<synchronous>, transform_indices = @transform_5, window_bounds = array<i64: 4, 16>}]} {
    %c0 = arith.constant 0 : index
    %c0_0 = arith.constant 0 : index
    %0 = vector.load %arg1[%c0, %c0_0] : memref<4x8xi32, #tpu.memory_space<vmem>>, vector<4x8xi32>
    %1 = tpu.iota {dimensions = array<i32: 2>} : vector<4x8x128xi32>
    %2 = tpu.iota {dimensions = array<i32: 1>} : vector<4x8x128xi32>
    %3 = vector.shape_cast %0 : vector<4x8xi32> to vector<4x8x1xi32>
    %c16_i32 = arith.constant 16 : i32
    %4 = vector.broadcast %c16_i32 : i32 to vector<4x8x128xi32>
    %5 = arith.muli %2, %4 : vector<4x8x128xi32>
    %6 = vector.broadcast %3 : vector<4x8x1xi32> to vector<4x8x128xi32>
    %7 = arith.addi %6, %5 : vector<4x8x128xi32>
    %8 = arith.cmpi eq, %1, %7 : vector<4x8x128xi32>
    %9 = arith.extui %8 : vector<4x8x128xi1> to vector<4x8x128xi32>
    %10 = arith.sitofp %9 : vector<4x8x128xi32> to vector<4x8x128xf32>
    %cst = arith.constant dense<0.000000e+00> : vector<4x128xf32>
    %11 = vector.multi_reduction <add>, %10, %cst [1] : vector<4x8x128xf32> to vector<4x128xf32>
    %12 = arith.truncf %11 : vector<4x128xf32> to vector<4x128xbf16>
    %c0_1 = arith.constant 0 : index
    %c0_2 = arith.constant 0 : index
    %13 = vector.load %arg3[%c0_1, %c0_2] : memref<3x128xf32, #tpu.memory_space<vmem>>, vector<3x128xf32>
    %c0_3 = arith.constant 0 : index
    %c0_4 = arith.constant 0 : index
    %14 = vector.load %arg2[%c0_3, %c0_4] : memref<128x64xbf16, #tpu.memory_space<vmem>>, vector<128x64xbf16>
    %cst_5 = arith.constant dense<0.000000e+00> : vector<4x64xf32>
    %15 = tpu.matmul %12, %14, %cst_5 {dimension_numbers = #tpu.dot_dimension_numbers<[1], [0], [0], [1], [0, 0, 1, 1], [], []>} : vector<4x128xbf16>, vector<128x64xbf16>, vector<4x64xf32> -> vector<4x64xf32>
    %16 = vector.extract_strided_slice %13 {offsets = [0, 0], sizes = [1, 64], strides = [1, 1]} : vector<3x128xf32> to vector<1x64xf32>
    %17 = vector.broadcast %16 : vector<1x64xf32> to vector<4x64xf32>
    %18 = arith.addf %15, %17 : vector<4x64xf32>
    %cst_6 = arith.constant 0.000000e+00 : f32
    %19 = vector.broadcast %cst_6 : f32 to vector<4x64xf32>
    %20 = arith.maximumf %18, %19 : vector<4x64xf32>
    %21 = arith.truncf %20 : vector<4x64xf32> to vector<4x64xbf16>
    %c0_7 = arith.constant 0 : index
    %c0_8 = arith.constant 0 : index
    %22 = vector.load %arg4[%c0_7, %c0_8] : memref<64x128xbf16, #tpu.memory_space<vmem>>, vector<64x128xbf16>
    %cst_9 = arith.constant dense<0.000000e+00> : vector<4x128xf32>
    %23 = tpu.matmul %21, %22, %cst_9 {dimension_numbers = #tpu.dot_dimension_numbers<[1], [0], [0], [1], [0, 0, 1, 1], [], []>} : vector<4x64xbf16>, vector<64x128xbf16>, vector<4x128xf32> -> vector<4x128xf32>
    %24 = vector.extract_strided_slice %13 {offsets = [1, 0], sizes = [1, 128], strides = [1, 1]} : vector<3x128xf32> to vector<1x128xf32>
    %25 = vector.broadcast %24 : vector<1x128xf32> to vector<4x128xf32>
    %26 = arith.addf %23, %25 : vector<4x128xf32>
    %cst_10 = arith.constant 0.000000e+00 : f32
    %27 = vector.broadcast %cst_10 : f32 to vector<4x128xf32>
    %28 = arith.maximumf %26, %27 : vector<4x128xf32>
    %29 = arith.truncf %28 : vector<4x128xf32> to vector<4x128xbf16>
    %c0_11 = arith.constant 0 : index
    %c0_12 = arith.constant 0 : index
    %30 = vector.load %arg5[%c0_11, %c0_12] : memref<128x16xbf16, #tpu.memory_space<vmem>>, vector<128x16xbf16>
    %cst_13 = arith.constant dense<0.000000e+00> : vector<4x16xf32>
    %31 = tpu.matmul %29, %30, %cst_13 {dimension_numbers = #tpu.dot_dimension_numbers<[1], [0], [0], [1], [0, 0, 1, 1], [], []>} : vector<4x128xbf16>, vector<128x16xbf16>, vector<4x16xf32> -> vector<4x16xf32>
    %32 = vector.extract_strided_slice %13 {offsets = [2, 0], sizes = [1, 16], strides = [1, 1]} : vector<3x128xf32> to vector<1x16xf32>
    %33 = vector.broadcast %32 : vector<1x16xf32> to vector<4x16xf32>
    %34 = arith.addf %31, %33 : vector<4x16xf32>
    %c0_14 = arith.constant 0 : index
    %c0_15 = arith.constant 0 : index
    %35 = vector.load %arg6[%c0_14, %c0_15] : memref<4x16xf32, #tpu.memory_space<vmem>>, vector<4x16xf32>
    tpu.vector_store %arg6[%c0_14, %c0_15], %34 {strides = array<i32>} : memref<4x16xf32, #tpu.memory_space<vmem>>, vector<4x16xf32>,
    return
  }
  func.func @transform_0(%arg0: i32) -> (i32, i32) {
    %c0_i32 = arith.constant 0 : i32
    %c0_i32_0 = arith.constant 0 : i32
    %c0_i32_1 = arith.constant 0 : i32
    return %c0_i32, %c0_i32_0 : i32, i32
  }
  func.func @transform_1(%arg0: i32) -> (i32, i32) {
    %c0_i32 = arith.constant 0 : i32
    %c0_i32_0 = arith.constant 0 : i32
    %c0_i32_1 = arith.constant 0 : i32
    return %c0_i32, %c0_i32_0 : i32, i32
  }
  func.func @transform_2(%arg0: i32) -> (i32, i32) {
    %c0_i32 = arith.constant 0 : i32
    %c0_i32_0 = arith.constant 0 : i32
    %c0_i32_1 = arith.constant 0 : i32
    return %c0_i32, %c0_i32_0 : i32, i32
  }
  func.func @transform_3(%arg0: i32) -> (i32, i32) {
    %c0_i32 = arith.constant 0 : i32
    %c0_i32_0 = arith.constant 0 : i32
    %c0_i32_1 = arith.constant 0 : i32
    return %c0_i32, %c0_i32_0 : i32, i32
  }
  func.func @transform_4(%arg0: i32) -> (i32, i32) {
    %c0_i32 = arith.constant 0 : i32
    %c0_i32_0 = arith.constant 0 : i32
    %c0_i32_1 = arith.constant 0 : i32
    return %c0_i32, %c0_i32_0 : i32, i32
  }
  func.func @transform_5(%arg0: i32) -> (i32, i32) {
    %c0_i32 = arith.constant 0 : i32
    %c0_i32_0 = arith.constant 0 : i32
    %c0_i32_1 = arith.constant 0 : i32
    return %c0_i32, %c0_i32_0 : i32, i32
  }
}

</mosaic_0001>

<bundles_post_ra>
// kernel: forward.1
= control target key start
LH: loop header
LB: loop body
LE: loop exit
PB: predicated region body
PF: predicated region fallthrough
CT: control target
= control target key end

     0   :  { %v23_v0 = vlaneseq  ;;  %v578_v2 = vmov 0.0   ;;  %vm579_vm0 = vmmov 0   ;;  %s729_s0 = inlined_call_operand.vmem [shape: s32[4,8], index: 0, kind: input, shape index: {}]   ;;  %s730_s1 = inlined_call_operand.vmem [shape: bf16[128,64], index: 1, kind: input, shape index: {}]   ;;  %s731_s2 = inlined_call_operand.vmem [shape: f32[3,128], index: 2, kind: input, shape index: {}]   ;;  %s732_s3 = inlined_call_operand.vmem [shape: bf16[64,128], index: 3, kind: input, shape index: {}]   ;;  %s733_s4 = inlined_call_operand.vmem [shape: bf16[128,16], index: 4, kind: input, shape index: {}]   ;;  %s734_s5 = inlined_call_operand.hbm [shape: f32[4,16], index: 5, kind: output, shape index: {}]  }
   0x1   :  { %v536_v1 = vld [vmem:[%s730_s1 + $0x38] sm:$0xff]   ;;  %481 = vmatprep.subr.bf16.mxu0 %v578_v2  ;;  %501 = vmatprep.subr.bf16.mxu1 %v578_v2  ;;  %v22_v3 = vld [vmem:[%s729_s0] sm:$0xf]  ;;  %v537_v5 = vld [vmem:[%s730_s1 + $0x30] sm:$0xff]  }
   0x2   :  { %v619_v4 = vshrl.u32 %v23_v0, 7  ;;  %482 = vmatpush3.bf16.msra.mxu0 %v536_v1  ;;  %v538_v10 = vld [vmem:[%s730_s1 + $0x28] sm:$0xff]   ;;  %v539_v15 = vld [vmem:[%s730_s1 + $0x20] sm:$0xff]   ;;  %v540_v16 = vld [vmem:[%s730_s1 + $0x18] sm:$0xff]   ;;  %497 = vmatprep.mubr.msk.bf16.mxu0 %vm579_vm0, %v578_v2 }
   0x3   :  { %483 = vmatprep.subr.bf16.mxu0 %v578_v2  ;;  %v541_v17 = vld [vmem:[%s730_s1 + $0x10] sm:$0xff]  }
   0x4   :  { %v43_v6 = vsub.s32 2, %v619_v4  ;;  %v29_v7 = vsub.s32 0, %v619_v4  ;;  %v50_v8 = vsub.s32 3, %v619_v4  ;;  %v36_v9 = vsub.s32 1, %v619_v4 }
   0x6   :  { %v44_v11 = vrot.slane %v22_v3, %v43_v6  ;;  %v30_v12 = vrot.slane %v22_v3, %v29_v7  ;;  %484 = vmatpush3.bf16.msra.mxu0 %v537_v5  ;;  %v51_v13 = vrot.slane %v22_v3, %v50_v8  ;;  %v37_v14 = vrot.slane %v22_v3, %v36_v9 }
   0x7   :  { %485 = vmatprep.subr.bf16.mxu0 %v578_v2 }
   0x8   :  { %46 = vbcast.lane.b32.xlu1 %v44_v11, 256  ;;  %32 = vbcast.lane.b32.xlu0 %v30_v12, 256 }
   0xa   :  { %486 = vmatpush3.bf16.msra.mxu0 %v538_v10 }
   0xb   :  { %487 = vmatprep.subr.bf16.mxu0 %v578_v2 }
   0xc   :  { %53 = vbcast.lane.b32.xlu1 %v51_v13, 256  ;;  %39 = vbcast.lane.b32.xlu0 %v37_v14, 256 }
   0xe   :  { %488 = vmatpush3.bf16.msra.mxu0 %v539_v15 }
   0xf   :  { %489 = vmatprep.subr.bf16.mxu0 %v578_v2 }
  0x12   :  { %490 = vmatpush3.bf16.msra.mxu0 %v540_v16 }
  0x13   :  { %10 = vsyncpa [#allocation3], 0  ;;  %491 = vmatprep.subr.bf16.mxu0 %v578_v2  ;;  %509 = vmatprep.mubr.msk.bf16.mxu1 %vm579_vm0, %v578_v2  ;;  %v542_v18 = vld [vmem:[%s730_s1 + $0x8] sm:$0xff]   ;;  %v544_v19 = vld [vmem:[%s732_s3 + $0x18] sm:$0xff]   ;;  %v55_v22 = vmul.u32 16, %v619_v4  ;;  %v24_v23 = vand.u32 127, %v23_v0 }
  0x14   :  { %v543_v20 = vld [vmem:[%s730_s1] sm:$0xff]   ;;  %502 = vmatpush3.bf16.msra.mxu1 %v544_v19  ;;  %v545_v21 = vld [vmem:[%s732_s3 + $0x10] sm:$0xff]   ;;  %vm129_vm5 = vcmask 1041409   ;;  %vm131_vm6 = vcmask 1042434   ;;  %vm133_vm7 = vcmask 1043459   ;;  %v546_v13 = vld [vmem:[%s732_s3 + $0x8] sm:$0xff]  }
  0x15   :  { %503 = vmatprep.subr.bf16.mxu1 %v578_v2  ;;  %v547_v14 = vld [vmem:[%s732_s3] sm:$0xff]   ;;  %vm263_vm8 = vcmask 523264   ;;  %s580_s7 = smov [#allocation2]   ;;  %vm417_vm9 = vcmask 125952  }
  0x16   :  { %492 = vmatpush3.bf16.msra.mxu0 %v541_v17  ;;  %v100_v15 = vld [vmem:[%s731_s2] sm:$0x7]  ;;  %s425_s8 = sshll.u32 %s580_s7, 4  ;;  %s426_s8 = int_to_ptr.vmem [resolvable:$true] %s425_s8 }
  0x17   :  { %493 = vmatprep.subr.bf16.mxu0 %v578_v2  ;;  %v120_v16 = vrot.slane %v100_v15, %v29_v7  ;;  %v550_v7 = vld [vmem:[%s733_s4 + $0x28] sm:$0xff]   ;;  %p561_p1 = scmp.lt.s32.totalorder %s426_s8, %s426_s8 }
  0x18   :  { %504 = vmatpush3.bf16.msra.mxu1 %v545_v21 }
  0x19   :  { %505 = vmatprep.subr.bf16.mxu1 %v578_v2 }
  0x1a   :  { %494 = vmatpush3.bf16.msra.mxu0 %v542_v18 }
  0x1b   :  { %495 = vmatprep.subr.bf16.mxu0 %v578_v2 }
  0x1c   :  { %506 = vmatpush3.bf16.msra.mxu1 %v546_v13 }
  0x1d   :  { %507 = vmatprep.subr.bf16.mxu1 %v578_v2 }
  0x1e   :  { %496 = vmatpush3.bf16.msra.mxu0 %v543_v20 }
  0x20   :  { %508 = vmatpush3.bf16.msra.mxu1 %v547_v14 }
  0x21   :  { %513 = vmatprep.subr.bf16.mxu1 %v578_v2 }
  0x7a   :  { %v47_v24 = vpop.permute.xlu1 %46  ;;  %v33_v25 = vpop.permute.xlu0 %32 }
  0x7b   :  { %v58_v26 = vadd.s32 %v55_v22, %v47_v24  ;;  %v56_v27 = vadd.s32 %v55_v22, %v33_v25  ;;  %v549_v25 = vld [vmem:[%s733_s4 + $0x30] sm:$0xff]  }
  0x7d   :  { %vm62_vm1 = vcmp.eq.s32.totalorder %v24_v23, %v58_v26  ;;  %vm60_vm2 = vcmp.eq.s32.totalorder %v24_v23, %v56_v27  ;;  %v551_v26 = vld [vmem:[%s733_s4 + $0x20] sm:$0xff]   ;;  %v552_v27 = vld [vmem:[%s733_s4 + $0x18] sm:$0xff]  }
  0x7e   :  { %v435_v28 = vsel %vm62_vm1, 1.0, %v578_v2  ;;  %v433_v29 = vsel %vm60_vm2, 1.0, %v578_v2  ;;  %v54_v30 = vpop.permute.xlu1 %53  ;;  %v40_v31 = vpop.permute.xlu0 %39 }
  0x7f   :  { %v84_v32 = vrot.slane %v435_v28, 4  ;;  %v72_v33 = vrot.slane %v433_v29, 4  ;;  %v59_v34 = vadd.s32 %v55_v22, %v54_v30  ;;  %v57_v35 = vadd.s32 %v55_v22, %v40_v31  ;;  %v548_v22 = vld [vmem:[%s733_s4 + $0x38] sm:$0xff]   ;;  %v555_v30 = vld [vmem:[%s733_s4] sm:$0xff]  }
  0x80   :  { %v238_v31 = vrot.slane %v100_v15, %v36_v9 }
  0x81   :  { %v85_v36 = vadd.f32 %v435_v28, %v84_v32  ;;  %v73_v37 = vadd.f32 %v433_v29, %v72_v33  ;;  %vm63_vm3 = vcmp.eq.s32.totalorder %v24_v23, %v59_v34  ;;  %vm61_vm4 = vcmp.eq.s32.totalorder %v24_v23, %v57_v35  ;;  %v553_v28 = vld [vmem:[%s733_s4 + $0x10] sm:$0xff]   ;;  %v554_v29 = vld [vmem:[%s733_s4 + $0x8] sm:$0xff]   ;;  %s556_s4 = scalar_lea.vmem %s426_s8, 64 }
  0x82   :  { %v436_v38 = vsel %vm63_vm3, 1.0, %v578_v2  ;;  %v434_v39 = vsel %vm61_vm4, 1.0, %v578_v2  ;;  %p557_p0 = scmp.ne.s32.totalorder %s426_s8, %s556_s4  ;;  %p562_p2 = scmp.lt.s32.totalorder %s556_s4, %s556_s4 }
  0x83   :  { %v86_v40 = vrot.slane %v85_v36, 2  ;;  %v74_v41 = vrot.slane %v73_v37, 2  ;;  %v90_v42 = vrot.slane %v436_v38, 4  ;;  %v78_v43 = vrot.slane %v434_v39, 4 }
  0x84   :  { %p563_p3 = por %p562_p2, %p561_p1 }
  0x85   :  { %v87_v44 = vadd.f32 %v86_v40, %v85_v36  ;;  %v75_v45 = vadd.f32 %v74_v41, %v73_v37  ;;  %v91_v46 = vadd.f32 %v436_v38, %v90_v42  ;;  %v79_v47 = vadd.f32 %v434_v39, %v78_v43 }
  0x86   :  { %v328_v39 = vrot.slane %v100_v15, %v43_v6  ;;  %p564_p4 = pnand %p563_p3, %p557_p0 }
  0x87   :  { %v88_v48 = vrot.slane %v87_v44, 1  ;;  %v76_v49 = vrot.slane %v75_v45, 1  ;;  %v92_v50 = vrot.slane %v91_v46, 2  ;;  %v80_v51 = vrot.slane %v79_v47, 2 }
  0x89   :  { %v77_v52 = vadd.f32 %v76_v49, %v75_v45  ;;  %v93_v53 = vadd.f32 %v92_v50, %v91_v46  ;;  %v81_v54 = vadd.f32 %v80_v51, %v79_v47  ;;  %v89_v55 = vadd.f32 %v88_v48, %v87_v44 }
  0x8b   :  { %v94_v56 = vrot.slane %v93_v53, 1  ;;  %v82_v57 = vrot.slane %v81_v54, 1  ;;  %v96_v58 = vpack.c.bf16 %v77_v52, %v77_v52  ;;  %v98_v61 = vpack.c.bf16 %v89_v55, %v89_v55 }
  0x8d   :  { %v95_v59 = vadd.f32 %v94_v56, %v93_v53  ;;  %v83_v60 = vadd.f32 %v82_v57, %v81_v54  ;;  %v125_v0 = vunpack.c.l.b16 %v96_v58  ;;  %v127_v3 = vunpack.c.l.b16 %v98_v61 }
  0x8f   :  { %v99_v62 = vpack.c.bf16 %v95_v59, %v95_v59  ;;  %v97_v63 = vpack.c.bf16 %v83_v60, %v83_v60 }
  0x91   :  { %v126_v1 = vunpack.c.l.b16 %v97_v63  ;;  %v128_v5 = vunpack.c.l.b16 %v99_v62 }
  0x93   :  { %v130_v8 = vsel %vm129_vm5, %v126_v1, %v125_v0 }
  0x94   :  { %v132_v10 = vsel %vm131_vm6, %v127_v3, %v130_v8 }
  0x95   :  { %v134_v11 = vsel %vm133_vm7, %v128_v5, %v132_v10 }
  0x96   :  { %v135_v12 = vpack.c.b16 %v134_v11, %v134_v11 }
  0x98   :  { %498 = vmatmul.mubr.bf16.vlgmr.msra.gmra.mxu0 %v135_v12 }
 0x158   :  { %v219_v17 = vpop.f32.mrf.mxu0 }
 0x159   :  { %v220_v18 = vadd.f32 %v219_v17, %v120_v16 }
 0x15a   :  { %v499_v19 = vpop.f32.mrf.mxu0 }
 0x15b   :  { %v225_v20 = vmax.f32 %v220_v18, 0.0 }
 0x15c   :  { %v222_v21 = vpop.f32.mrf.mxu0 }
 0x15d   :  { %v226_v23 = vpack.c.bf16 %v225_v20, %v225_v20 }
 0x15e   :  { %v500_v24 = vpop.f32.mrf.mxu0 }
 0x15f   :  { %510 = vmatmul.mubr.msk.bf16.vlgmr.msra.gmra.mxu1 %vm263_vm8, %v226_v23 }
 0x160   :  { %514 = vmatpush3.bf16.msra.mxu1 %v548_v22  ;;  %529 = vmatprep.mubr.msk.bf16.mxu1 %vm579_vm0, %v578_v2 }
 0x161   :  { %515 = vmatprep.subr.bf16.mxu1 %v578_v2 }
 0x164   :  { %516 = vmatpush3.bf16.msra.mxu1 %v549_v25 }
 0x165   :  { %517 = vmatprep.subr.bf16.mxu1 %v578_v2 }
 0x168   :  { %518 = vmatpush3.bf16.msra.mxu1 %v550_v7 }
 0x169   :  { %519 = vmatprep.subr.bf16.mxu1 %v578_v2 }
 0x16c   :  { %520 = vmatpush3.bf16.msra.mxu1 %v551_v26 }
 0x16d   :  { %521 = vmatprep.subr.bf16.mxu1 %v578_v2 }
 0x170   :  { %522 = vmatpush3.bf16.msra.mxu1 %v552_v27 }
 0x171   :  { %523 = vmatprep.subr.bf16.mxu1 %v578_v2 }
 0x174   :  { %524 = vmatpush3.bf16.msra.mxu1 %v553_v28 }
 0x175   :  { %525 = vmatprep.subr.bf16.mxu1 %v578_v2 }
 0x178   :  { %526 = vmatpush3.bf16.msra.mxu1 %v554_v29 }
 0x179   :  { %527 = vmatprep.subr.bf16.mxu1 %v578_v2 }
 0x17c   :  { %528 = vmatpush3.bf16.msra.mxu1 %v555_v30 }
 0x21f   :  { %v301_v32 = vpop.f32.mrf.mxu1 }
 0x220   :  { %v302_v33 = vadd.f32 %v301_v32, %v238_v31 }
 0x221   :  { %v511_v34 = vpop.f32.mrf.mxu1 }
 0x222   :  { %v307_v35 = vmax.f32 %v302_v33, 0.0 }
 0x223   :  { %v304_v36 = vpop.f32.mrf.mxu1 }
 0x224   :  { %v308_v37 = vpack.c.bf16 %v307_v35, %v307_v35 }
 0x225   :  { %v512_v38 = vpop.f32.mrf.mxu1 }
 0x226   :  { %530 = vmatmul.mubr.bf16.vlgmr.msra.gmra.mxu1 %v308_v37 }
 0x2e6   :  { %v411_v2 = vpop.f32.mrf.mxu1 }
 0x2e7   :  { %v412_v40 = vadd.f32 %v411_v2, %v328_v39 }
 0x2e8   :  { %v531_v41 = vpop.f32.mrf.mxu1 }
 0x2e9   :  { %418 = vst.msk [vmem:[#allocation2] sm:$0xf] %vm417_vm9, %v412_v40 }
 0x2ea   :  { %v414_v9 = vpop.f32.mrf.mxu1 }
 0x2eb   :  { %567 = shalt.err (!%p564_p4)
}
 0x2ec   :  { %428 = dma.vmem_to_hbm [thread:$0]  %s426_s8, 64, %s734_s5, [#allocation3]   ;;  %v532_v4 = vpop.f32.mrf.mxu1 }
 0x2ed   :  { %576 = dma.done.wait [#allocation3], 64  }
 0x2ee   :  { %577 = vsyncadd [#allocation3], 4294967232 }
 0x2ef   :  { %432 = vsyncpa [#allocation3], 1 }

</bundles_post_ra>
